<compile_context>
chip_gen: v7x
topology: tpu7x:2x2x1
jax: 0.10.0
libtpu: 0.0.40
codegen_flags: <defaults>
</compile_context>

<pallas_src>
import functools

import jax
import jax.numpy as jnp
from jax.experimental import pallas as pl
from jax.experimental.pallas import tpu as pltpu


def _dice_partials_kernel(scores_ref, labels_ref,
                          inter_out, y_out, z_out,
                          *, softmax, need_mask, hw, tile, tiles_per_split):
    """Grid = (N, pixel_splits, tiles_per_split); axis 2 is the reduction.

    Outputs are (C, 1) blocks whose block index is constant along axis 2, so
    they stay resident in VMEM and act as the accumulators (no scratch).
    """
    t_idx = pl.program_id(2)

    @pl.when(t_idx == 0)
    def _():
        inter_out[...] = jnp.zeros_like(inter_out)
        y_out[...] = jnp.zeros_like(y_out)
        z_out[...] = jnp.zeros_like(z_out)

    s = scores_ref[...].astype(jnp.float32)      # (C, T), upcast in-kernel
    lab = labels_ref[...].astype(jnp.int32)      # (1, T)
    C, T = s.shape

    if softmax:
        # Per-pixel softmax over the class (sublane) axis, fused in-kernel.
        m = jnp.max(s, axis=0, keepdims=True)
        e = jnp.exp(s - m)                       # EUP slot (otherwise idle)
        denom = jnp.sum(e, axis=0, keepdims=True)
        # One EUP reciprocal per pixel + broadcast VPU mul instead of a
        # full (C, T) divide.
        s = e * pl.reciprocal(denom, approx=True)

    cls_ids = jax.lax.broadcasted_iota(jnp.int32, (C, T), 0)
    onehot = lab == cls_ids                      # (C, T) bool
    inter_t = jnp.where(onehot, s, 0.0)          # score * onehot
    y_t = onehot.astype(jnp.float32)             # onehot * onehot == onehot
    z_t = s * s

    def _accumulate(it, yt, zt):
        # In-tile lane reductions (XLU) + tiny VMEM accumulator adds.
        inter_out[...] += jnp.sum(it, axis=1, keepdims=True)
        y_out[...] += jnp.sum(yt, axis=1, keepdims=True)
        z_out[...] += jnp.sum(zt, axis=1, keepdims=True)

    if need_mask:
        # Only the tile(s) that overhang the pixel axis pay the mask work.
        start = (pl.program_id(1) * tiles_per_split + t_idx) * tile
        is_full = start + tile <= hw

        @pl.when(is_full)
        def _():
            _accumulate(inter_t, y_t, z_t)

        @pl.when(jnp.logical_not(is_full))
        def _():
            lane = jax.lax.broadcasted_iota(jnp.int32, (1, T), 1)
            valid = (start + lane) < hw          # (1, T) bool
            _accumulate(jnp.where(valid, inter_t, 0.0),
                        jnp.where(valid, y_t, 0.0),
                        jnp.where(valid, z_t, 0.0))
    else:
        _accumulate(inter_t, y_t, z_t)


def _choose_tile(n_classes, hw, itemsize, vmem_budget_bytes, max_tile=131072):
    """Largest 128-multiple tile whose working set fits the VMEM budget."""
    c_pad = ((n_classes + 7) // 8) * 8
    # Bytes resident per lane of tile:
    #   double-buffered scores block (padded to 8 sublanes)
    # + double-buffered int32 labels block (1-row block pads to 8 sublanes)
    # + headroom for ~8 live f32 (C, tile)-shaped temporaries in the body.
    per_lane = 2 * c_pad * itemsize + 2 * 8 * 4 + 8 * c_pad * 4
    t = vmem_budget_bytes // per_lane
    t = max(128, min(int(t), max_tile))
    if t >= hw:
        return hw                                 # single tile, full extent
    return (t // 128) * 128


def _tensorcores_per_device():
    """Best-effort TC count per JAX device.

    The pixel-split "parallel" axis only helps when a device has >1
    TensorCore (v7x); on single-TC v5e/v6e it is pure overhead.
    """
    try:
        kind = (jax.devices()[0].device_kind or "").lower()
    except Exception:
        return 1
    return 2 if ("v7" in kind or "7x" in kind) else 1


def dice_loss(inputs, target, n_classes, weight=None, softmax=False,
              tile=None, pixel_splits=None,
              vmem_budget_bytes=40 * 1024 * 1024):
    """Pallas implementation of DiceLoss.forward.

    inputs: (N, C, H, W) float scores (NCHW, like PyTorch); f32 or bf16
    target: (N, H, W) integer class labels in [0, n_classes)
    """
    N, C, H, W = inputs.shape
    assert C == n_classes, "channel dim must equal n_classes"
    HW = H * W

    # Free reshapes (merge trailing dims); no transpose, no host dtype cast.
    scores = inputs.reshape(N, C, HW)
    if jnp.issubdtype(target.dtype, jnp.integer):
        labels = target.reshape(N, 1, HW)         # narrow int dtypes stream as-is
    else:
        labels = target.reshape(N, 1, HW).astype(jnp.int32)

    itemsize = jnp.dtype(scores.dtype).itemsize
    if tile is None:
        tile = _choose_tile(C, HW, itemsize, vmem_budget_bytes)
    n_tiles = pl.cdiv(HW, tile)

    # Pixel-split axis only by default on multi-TC devices (v7x) when the
    # batch axis alone can't feed both cores.
    if pixel_splits is None:
        tc = _tensorcores_per_device()
        pixel_splits = tc if N < tc else 1
    S = max(1, min(pixel_splits, n_tiles))
    tiles_per_split = pl.cdiv(n_tiles, S)

    clamp = S * tiles_per_split > n_tiles            # some logical blocks overhang
    need_mask = S * tiles_per_split * tile != HW     # partial / overhanging lanes

    def _blk(s, t):
        idx = s * tiles_per_split + t
        if clamp:
            # Re-read the last valid block; its lanes are masked off in-kernel.
            idx = jnp.minimum(idx, n_tiles - 1)
        return idx

    kernel = functools.partial(
        _dice_partials_kernel,
        softmax=bool(softmax), need_mask=bool(need_mask),
        hw=HW, tile=tile, tiles_per_split=tiles_per_split)

    out_sds = jax.ShapeDtypeStruct((N, S, C, 1), jnp.float32)
    out_spec = pl.BlockSpec((None, None, C, 1), lambda n, s, t: (n, s, 0, 0))

    # Keep the scoped-VMEM limit in sync with the tile budget; cap at 48 MiB
    # so the configuration also fits v7x's 64 MiB-per-TC VMEM (v5e's default
    # scoped limit is only 16 MiB, so the explicit raise is required there).
    vmem_limit = int(min(max(vmem_budget_bytes + 8 * 1024 * 1024,
                             32 * 1024 * 1024),
                         48 * 1024 * 1024))

    inter, y_sum, z_sum = pl.pallas_call(
        kernel,
        out_shape=(out_sds, out_sds, out_sds),
        grid_spec=pltpu.PrefetchScalarGridSpec(
            num_scalar_prefetch=0,
            grid=(N, S, tiles_per_split),
            in_specs=[
                pl.BlockSpec((None, C, tile),
                             lambda n, s, t: (n, 0, _blk(s, t))),   # scores
                pl.BlockSpec((None, 1, tile),
                             lambda n, s, t: (n, 0, _blk(s, t))),   # labels
            ],
            out_specs=(out_spec, out_spec, out_spec),
        ),
        compiler_params=pltpu.CompilerParams(
            dimension_semantics=("parallel", "parallel", "arbitrary"),
            vmem_limit_bytes=vmem_limit),
    )(scores, labels)

    # Tiny epilogue in plain JAX on C floats.
    inter = jnp.sum(inter, axis=(0, 1, 3))   # (C,)
    y_sum = jnp.sum(y_sum, axis=(0, 1, 3))
    z_sum = jnp.sum(z_sum, axis=(0, 1, 3))

    smooth = 1e-05
    dice = 1.0 - (2.0 * inter + smooth) / (z_sum + y_sum + smooth)
    if weight is None:
        w = jnp.ones((C,), dtype=jnp.float32)
    else:
        w = jnp.asarray(weight, dtype=jnp.float32)
    return jnp.sum(dice * w) / n_classes


def dice_loss_ref(inputs, target, n_classes, weight=None, softmax=False):
    """Pure-JAX reference mirroring the PyTorch module."""
    if softmax:
        inputs = jax.nn.softmax(inputs, axis=1)
    if weight is None:
        weight = [1.0] * n_classes
    smooth = 1e-05
    loss = 0.0
    for i in range(n_classes):
        score = inputs[:, i].astype(jnp.float32)
        tgt = (target == i).astype(jnp.float32)
        intersect = jnp.sum(score * tgt)
        y_sum = jnp.sum(tgt * tgt)
        z_sum = jnp.sum(score * score)
        dice = 1.0 - (2.0 * intersect + smooth) / (z_sum + y_sum + smooth)
        loss = loss + dice * weight[i]
    return loss / n_classes


if __name__ == "__main__":
    n_classes = 4
    N, H, W = 2, 16, 16

    key = jax.random.PRNGKey(0)
    k1, k2 = jax.random.split(key)
    inputs = jax.random.normal(k1, (N, n_classes, H, W), dtype=jnp.float32)
    target = jax.random.randint(k2, (N, H, W), 0, n_classes, dtype=jnp.int32)

    # default forward (softmax=False, weight=None), like the PyTorch module
    out = jax.block_until_ready(dice_loss(inputs, target, n_classes))
    ref = dice_loss_ref(inputs, target, n_classes)
    assert jnp.allclose(out, ref, atol=1e-5, rtol=1e-5), (out, ref)

    # fused in-kernel softmax path (approx reciprocal -> looser tolerance)
    out_sm = jax.block_until_ready(
        dice_loss(inputs, target, n_classes, softmax=True))
    ref_sm = dice_loss_ref(inputs, target, n_classes, softmax=True)
    assert jnp.allclose(out_sm, ref_sm, atol=2e-3, rtol=2e-3), (out_sm, ref_sm)

    # per-class weights (handled in the JAX epilogue)
    wts = [0.5, 1.0, 1.5, 2.0]
    out_w = jax.block_until_ready(
        dice_loss(inputs, target, n_classes, weight=wts))
    ref_w = dice_loss_ref(inputs, target, n_classes, weight=wts)
    assert jnp.allclose(out_w, ref_w, atol=1e-5, rtol=1e-5), (out_w, ref_w)

    # non-multiple-of-128 spatial size + forced small tile + 2-way pixel split:
    # exercises the @pl.when-gated partial-tile lane mask and the clamped
    # (duplicated) block indices.
    H2 = W2 = 17
    inputs2 = jax.random.normal(k1, (1, n_classes, H2, W2), dtype=jnp.float32)
    target2 = jax.random.randint(k2, (1, H2, W2), 0, n_classes, dtype=jnp.int32)
    out2 = jax.block_until_ready(
        dice_loss(inputs2, target2, n_classes, tile=128, pixel_splits=2))
    ref2 = dice_loss_ref(inputs2, target2, n_classes)
    assert jnp.allclose(out2, ref2, atol=1e-5, rtol=1e-5), (out2, ref2)

    # softmax through the masked / clamped path (garbage padding lanes must
    # not leak through the fused softmax into the partials)
    out2_sm = jax.block_until_ready(
        dice_loss(inputs2, target2, n_classes, softmax=True,
                  tile=128, pixel_splits=2))
    ref2_sm = dice_loss_ref(inputs2, target2, n_classes, softmax=True)
    assert jnp.allclose(out2_sm, ref2_sm, atol=2e-3, rtol=2e-3), (out2_sm, ref2_sm)

    print("KERNEL_OK")
</pallas_src>

<mosaic_0001>
module attributes {stable_mosaic.version = 11 : i64} {
  func.func @_dice_partials_kernel(%arg0: i32, %arg1: i32, %arg2: i32, %arg3: memref<1x4x256xf32, #tpu.memory_space<vmem>>, %arg4: memref<1x1x256xi32, #tpu.memory_space<vmem>>, %arg5: memref<1x1x4x1xf32, #tpu.memory_space<vmem>>, %arg6: memref<1x1x4x1xf32, #tpu.memory_space<vmem>>, %arg7: memref<1x1x4x1xf32, #tpu.memory_space<vmem>>) attributes {dimension_semantics = [#tpu.dimension_semantics<parallel>, #tpu.dimension_semantics<parallel>, #tpu.dimension_semantics<arbitrary>], iteration_bounds = array<i64: 2, 1, 1>, scalar_prefetch = 0 : i64, scratch_operands = 0 : i64, tpu.core_type = #tpu.core_type<tc>, window_params = [{transform_indices = @transform_0, window_bounds = array<i64: 1, 4, 256>}, {transform_indices = @transform_1, window_bounds = array<i64: 1, 1, 256>}, {transform_indices = @transform_2, window_bounds = array<i64: 1, 1, 4, 1>}, {transform_indices = @transform_3, window_bounds = array<i64: 1, 1, 4, 1>}, {transform_indices = @transform_4, window_bounds = array<i64: 1, 1, 4, 1>}]} {
    %c0_i32 = arith.constant 0 : i32
    %0 = arith.cmpi eq, %arg2, %c0_i32 : i32
    %1 = arith.extui %0 : i1 to i32
    %c0_i32_0 = arith.constant 0 : i32
    %2 = arith.cmpi ne, %1, %c0_i32_0 : i32
    scf.if %2 {
      %cst_33 = arith.constant 0.000000e+00 : f32
      %39 = vector.broadcast %cst_33 : f32 to vector<4x1xf32>
      %c0_34 = arith.constant 0 : index
      %c0_35 = arith.constant 0 : index
      %c0_36 = arith.constant 0 : index
      %c0_37 = arith.constant 0 : index
      %40 = vector.load %arg5[%c0_34, %c0_35, %c0_36, %c0_37] : memref<1x1x4x1xf32, #tpu.memory_space<vmem>>, vector<1x1x4x1xf32>
      %41 = vector.shape_cast %40 : vector<1x1x4x1xf32> to vector<4x1xf32>
      %42 = vector.shape_cast %39 : vector<4x1xf32> to vector<1x1x4x1xf32>
      tpu.vector_store %arg5[%c0_34, %c0_35, %c0_36, %c0_37], %42 {strides = array<i32>} : memref<1x1x4x1xf32, #tpu.memory_space<vmem>>, vector<1x1x4x1xf32>,
      %cst_38 = arith.constant 0.000000e+00 : f32
      %43 = vector.broadcast %cst_38 : f32 to vector<4x1xf32>
      %c0_39 = arith.constant 0 : index
      %c0_40 = arith.constant 0 : index
      %c0_41 = arith.constant 0 : index
      %c0_42 = arith.constant 0 : index
      %44 = vector.load %arg6[%c0_39, %c0_40, %c0_41, %c0_42] : memref<1x1x4x1xf32, #tpu.memory_space<vmem>>, vector<1x1x4x1xf32>
      %45 = vector.shape_cast %44 : vector<1x1x4x1xf32> to vector<4x1xf32>
      %46 = vector.shape_cast %43 : vector<4x1xf32> to vector<1x1x4x1xf32>
      tpu.vector_store %arg6[%c0_39, %c0_40, %c0_41, %c0_42], %46 {strides = array<i32>} : memref<1x1x4x1xf32, #tpu.memory_space<vmem>>, vector<1x1x4x1xf32>,
      %cst_43 = arith.constant 0.000000e+00 : f32
      %47 = vector.broadcast %cst_43 : f32 to vector<4x1xf32>
      %c0_44 = arith.constant 0 : index
      %c0_45 = arith.constant 0 : index
      %c0_46 = arith.constant 0 : index
      %c0_47 = arith.constant 0 : index
      %48 = vector.load %arg7[%c0_44, %c0_45, %c0_46, %c0_47] : memref<1x1x4x1xf32, #tpu.memory_space<vmem>>, vector<1x1x4x1xf32>
      %49 = vector.shape_cast %48 : vector<1x1x4x1xf32> to vector<4x1xf32>
      %50 = vector.shape_cast %47 : vector<4x1xf32> to vector<1x1x4x1xf32>
      tpu.vector_store %arg7[%c0_44, %c0_45, %c0_46, %c0_47], %50 {strides = array<i32>} : memref<1x1x4x1xf32, #tpu.memory_space<vmem>>, vector<1x1x4x1xf32>,
    } else {
    }
    %c0 = arith.constant 0 : index
    %c0_1 = arith.constant 0 : index
    %c0_2 = arith.constant 0 : index
    %3 = vector.load %arg3[%c0, %c0_1, %c0_2] : memref<1x4x256xf32, #tpu.memory_space<vmem>>, vector<1x4x256xf32>
    %4 = vector.shape_cast %3 : vector<1x4x256xf32> to vector<4x256xf32>
    %c0_3 = arith.constant 0 : index
    %c0_4 = arith.constant 0 : index
    %c0_5 = arith.constant 0 : index
    %5 = vector.load %arg4[%c0_3, %c0_4, %c0_5] : memref<1x1x256xi32, #tpu.memory_space<vmem>>, vector<1x1x256xi32>
    %6 = vector.shape_cast %5 : vector<1x1x256xi32> to vector<1x256xi32>
    %7 = tpu.iota {dimensions = array<i32: 0>} : vector<4x256xi32>
    %8 = vector.broadcast %6 : vector<1x256xi32> to vector<4x256xi32>
    %9 = arith.cmpi eq, %8, %7 : vector<4x256xi32>
    %cst = arith.constant 0.000000e+00 : f32
    %10 = vector.broadcast %cst : f32 to vector<4x256xf32>
    %11 = arith.select %9, %4, %10 : vector<4x256xi1>, vector<4x256xf32>
    %12 = arith.extui %9 : vector<4x256xi1> to vector<4x256xi32>
    %13 = arith.sitofp %12 : vector<4x256xi32> to vector<4x256xf32>
    %14 = arith.mulf %4, %4 : vector<4x256xf32>
    %c0_6 = arith.constant 0 : index
    %c0_7 = arith.constant 0 : index
    %c0_8 = arith.constant 0 : index
    %c0_9 = arith.constant 0 : index
    %15 = vector.load %arg5[%c0_6, %c0_7, %c0_8, %c0_9] : memref<1x1x4x1xf32, #tpu.memory_space<vmem>>, vector<1x1x4x1xf32>
    %16 = vector.shape_cast %15 : vector<1x1x4x1xf32> to vector<4x1xf32>
    %cst_10 = arith.constant dense<0.000000e+00> : vector<4xf32>
    %17 = vector.multi_reduction <add>, %11, %cst_10 [1] : vector<4x256xf32> to vector<4xf32>
    %18 = vector.shape_cast %17 : vector<4xf32> to vector<4x1xf32>
    %19 = arith.addf %16, %18 : vector<4x1xf32>
    %c0_11 = arith.constant 0 : index
    %c0_12 = arith.constant 0 : index
    %c0_13 = arith.constant 0 : index
    %c0_14 = arith.constant 0 : index
    %20 = vector.load %arg5[%c0_11, %c0_12, %c0_13, %c0_14] : memref<1x1x4x1xf32, #tpu.memory_space<vmem>>, vector<1x1x4x1xf32>
    %21 = vector.shape_cast %20 : vector<1x1x4x1xf32> to vector<4x1xf32>
    %22 = vector.shape_cast %19 : vector<4x1xf32> to vector<1x1x4x1xf32>
    tpu.vector_store %arg5[%c0_11, %c0_12, %c0_13, %c0_14], %22 {strides = array<i32>} : memref<1x1x4x1xf32, #tpu.memory_space<vmem>>, vector<1x1x4x1xf32>,
    %c0_15 = arith.constant 0 : index
    %c0_16 = arith.constant 0 : index
    %c0_17 = arith.constant 0 : index
    %c0_18 = arith.constant 0 : index
    %23 = vector.load %arg6[%c0_15, %c0_16, %c0_17, %c0_18] : memref<1x1x4x1xf32, #tpu.memory_space<vmem>>, vector<1x1x4x1xf32>
    %24 = vector.shape_cast %23 : vector<1x1x4x1xf32> to vector<4x1xf32>
    %cst_19 = arith.constant dense<0.000000e+00> : vector<4xf32>
    %25 = vector.multi_reduction <add>, %13, %cst_19 [1] : vector<4x256xf32> to vector<4xf32>
    %26 = vector.shape_cast %25 : vector<4xf32> to vector<4x1xf32>
    %27 = arith.addf %24, %26 : vector<4x1xf32>
    %c0_20 = arith.constant 0 : index
    %c0_21 = arith.constant 0 : index
    %c0_22 = arith.constant 0 : index
    %c0_23 = arith.constant 0 : index
    %28 = vector.load %arg6[%c0_20, %c0_21, %c0_22, %c0_23] : memref<1x1x4x1xf32, #tpu.memory_space<vmem>>, vector<1x1x4x1xf32>
    %29 = vector.shape_cast %28 : vector<1x1x4x1xf32> to vector<4x1xf32>
    %30 = vector.shape_cast %27 : vector<4x1xf32> to vector<1x1x4x1xf32>
    tpu.vector_store %arg6[%c0_20, %c0_21, %c0_22, %c0_23], %30 {strides = array<i32>} : memref<1x1x4x1xf32, #tpu.memory_space<vmem>>, vector<1x1x4x1xf32>,
    %c0_24 = arith.constant 0 : index
    %c0_25 = arith.constant 0 : index
    %c0_26 = arith.constant 0 : index
    %c0_27 = arith.constant 0 : index
    %31 = vector.load %arg7[%c0_24, %c0_25, %c0_26, %c0_27] : memref<1x1x4x1xf32, #tpu.memory_space<vmem>>, vector<1x1x4x1xf32>
    %32 = vector.shape_cast %31 : vector<1x1x4x1xf32> to vector<4x1xf32>
    %cst_28 = arith.constant dense<0.000000e+00> : vector<4xf32>
    %33 = vector.multi_reduction <add>, %14, %cst_28 [1] : vector<4x256xf32> to vector<4xf32>
    %34 = vector.shape_cast %33 : vector<4xf32> to vector<4x1xf32>
    %35 = arith.addf %32, %34 : vector<4x1xf32>
    %c0_29 = arith.constant 0 : index
    %c0_30 = arith.constant 0 : index
    %c0_31 = arith.constant 0 : index
    %c0_32 = arith.constant 0 : index
    %36 = vector.load %arg7[%c0_29, %c0_30, %c0_31, %c0_32] : memref<1x1x4x1xf32, #tpu.memory_space<vmem>>, vector<1x1x4x1xf32>
    %37 = vector.shape_cast %36 : vector<1x1x4x1xf32> to vector<4x1xf32>
    %38 = vector.shape_cast %35 : vector<4x1xf32> to vector<1x1x4x1xf32>
    tpu.vector_store %arg7[%c0_29, %c0_30, %c0_31, %c0_32], %38 {strides = array<i32>} : memref<1x1x4x1xf32, #tpu.memory_space<vmem>>, vector<1x1x4x1xf32>,
    return
  }
  func.func @transform_0(%arg0: i32, %arg1: i32, %arg2: i32) -> (i32, i32, i32) {
    %c1_i32 = arith.constant 1 : i32
    %0 = arith.muli %arg1, %c1_i32 : i32
    %1 = arith.addi %0, %arg2 : i32
    %c0_i32 = arith.constant 0 : i32
    %c0_i32_0 = arith.constant 0 : i32
    return %arg0, %c0_i32, %1 : i32, i32, i32
  }
  func.func @transform_1(%arg0: i32, %arg1: i32, %arg2: i32) -> (i32, i32, i32) {
    %c1_i32 = arith.constant 1 : i32
    %0 = arith.muli %arg1, %c1_i32 : i32
    %1 = arith.addi %0, %arg2 : i32
    %c0_i32 = arith.constant 0 : i32
    %c0_i32_0 = arith.constant 0 : i32
    return %arg0, %c0_i32, %1 : i32, i32, i32
  }
  func.func @transform_2(%arg0: i32, %arg1: i32, %arg2: i32) -> (i32, i32, i32, i32) {
    %c0_i32 = arith.constant 0 : i32
    %c0_i32_0 = arith.constant 0 : i32
    %c0_i32_1 = arith.constant 0 : i32
    return %arg0, %arg1, %c0_i32, %c0_i32_0 : i32, i32, i32, i32
  }
  func.func @transform_3(%arg0: i32, %arg1: i32, %arg2: i32) -> (i32, i32, i32, i32) {
    %c0_i32 = arith.constant 0 : i32
    %c0_i32_0 = arith.constant 0 : i32
    %c0_i32_1 = arith.constant 0 : i32
    return %arg0, %arg1, %c0_i32, %c0_i32_0 : i32, i32, i32, i32
  }
  func.func @transform_4(%arg0: i32, %arg1: i32, %arg2: i32) -> (i32, i32, i32, i32) {
    %c0_i32 = arith.constant 0 : i32
    %c0_i32_0 = arith.constant 0 : i32
    %c0_i32_1 = arith.constant 0 : i32
    return %arg0, %arg1, %c0_i32, %c0_i32_0 : i32, i32, i32, i32
  }
}

</mosaic_0001>

<bundles_post_ra>
// kernel: tpu_custom_call.1
= control target key start
LH: loop header
LB: loop body
LE: loop exit
PB: predicated region body
PF: predicated region fallthrough
CT: control target
= control target key end

     0   :  { %10 = vsyncpa [#allocation3], 0  ;;  %s1010_s0 = inlined_call_operand.hbm [shape: f32[2,4,256], index: 0, kind: input, shape index: {}]   ;;  %s1011_s1 = inlined_call_operand.hbm [shape: s32[2,1,256], index: 1, kind: input, shape index: {}]   ;;  %s1012_s2 = inlined_call_operand.vmem [shape: f32[2,1,4,1], index: 2, kind: output, shape index: {0}]   ;;  %s1013_s3 = inlined_call_operand.vmem [shape: f32[2,1,4,1], index: 3, kind: output, shape index: {1}]   ;;  %s1014_s4 = inlined_call_operand.vmem [shape: f32[2,1,4,1], index: 4, kind: output, shape index: {2}]  }
   0x1   :  { %12 = vsyncpa [#allocation3 + $0x1], 0 }
   0x2   :  { %13 = vsyncpa [#allocation5], 0 }
   0x3   :  { %15 = vsyncpa [#allocation5 + $0x1], 0  ;;  %s822_s15 = smov 0   ;;  %s824_s16 = smov 0  }
   0x4   :  { %s826_s17 = smov 0   ;;  %s828_s18 = smov 0  }
   0x5   :  { %s830_s19 = smov 0   ;;  %s832_s20 = smov 0  }
   0x6 LB: > { %s594_s21 = sadd.s32 4294967295, %s792_s20   ;;  %s40_s22 = sadd.s32 1, %s788_s19  ;;  %s792_s20 = sphi %s832_s20, %s21_s20   ;;  %s788_s19 = sphi %s830_s19, %s1028_s19   ;;  %s784_s18 = sphi %s828_s18, %s1027_s18   ;;  %s780_s17 = sphi %s826_s17, %s1026_s17   ;;  %s776_s16 = sphi %s824_s16, %s1025_s16   ;;  %s772_s15 = sphi %s822_s15, %s1024_s15  }
   0x7   : > { %p42_p0 = scmp.ge.s32.totalorder %s40_s22, 2  ;;  %s51_s23 = sadd.s32 1, %s780_s17 }
   0x8   : > { %p58_p1 = scmp.ne.s32.totalorder %s780_s17, %s776_s16  ;;  %p59_p2 = scmp.eq.s32.totalorder %s792_s20, 0 }
   0x9   : > { %s1030_s22 = smov (%p42_p0, %s40_s22), 0  ;;  %p64_p4 = scmp.ne.s32.totalorder %s776_s16, %s772_s15 }
   0xa   : > { %p858_p3 = por %p59_p2, %p58_p1  ;;  %s46_s25 = ssub.s32 %s788_s19, %s1030_s22 }
   0xb   : > { %p65_p5 = scmp.eq.s32.totalorder %s594_s21, 0  ;;  %p49_p6 = scmp.eq.s32.totalorder %s46_s25, 0 }
   0xc   : > { %p627_p8 = scmp.lt.s32.totalorder %s792_s20, 2  ;;  %s874_s28 = sand.u32 1, %s780_s17  }
   0xd   : > { %p865_p7 = por %p65_p5, %p64_p4  ;;  %s614_s29 = sshll.u32 %s788_s19, 7 }
   0xe   : > { %s871_s27 = scalar_select %p49_p6, %s780_s17, %s51_s23  }
   0xf   : > { %s1017_s26 = scalar_select %p865_p7, 1, 0 }
  0x10   : > { %s598_s30 = sshll.u32 %s874_s28, 3  ;;  %s881_s7 = scalar_lea.hbm %s1010_s0, %s614_s29 }
  0x11   : > { %s206_s8 = scalar_lea.vmem [#allocation2], %s598_s30  ;;  %p885_p9 = pnand %p627_p8, %p858_p3 }
  0x12   : > { %s217_s9 = sshll.u32 %s206_s8, 4  ;;  %s203_s11 = scalar_lea.sflag [#allocation3], %s874_s28  ;;  %s889_s9 = int_to_ptr.vmem [resolvable:$true] %s217_s9 }
  0x13   : > { %s678_s12 = scalar_lea.hbm %s881_s7, 128  ;;  %p680_p13 = pneg %p885_p9 }
  0x14   : > { %p679_p12 = scmp.ne.s32.totalorder %s881_s7, %s678_s12  ;;  %s683_s15 = scalar_lea.hbm %s1010_s0, 256 }
  0x15   : > { %p684_p2 = scmp.lt.u32.totalorder %s881_s7, %s1010_s0  ;;  %p685_p3 = scmp.lt.u32.totalorder %s683_s15, %s678_s12 }
  0x16   : > { %p681_p0 = pnand %p680_p13, %p679_p12  ;;  %p687_p5 = scmp.lt.u32.totalorder %s678_s12, %s881_s7 }
  0x17   : > { %p686_p4 = por %p685_p3, %p684_p2 }
  0x18   : > { %p682_p1 = pneg %p681_p0 }
  0x19   : > { %p688_p6 = por %p687_p5, %p686_p4 }
  0x1b   : > { %p689_p8 = pnand %p688_p6, %p682_p1 }
  0x1d   : > { %692 = shalt.err (!%p689_p8)
}
  0x1e   : > { %s693_s24 = scalar_lea.vmem %s889_s9, 128  ;;  %s794_s25 = smov [#allocation2]  }
  0x1f   : > { %p694_p12 = scmp.ne.s32.totalorder %s889_s9, %s693_s24  ;;  %s698_s29 = sshll.u32 %s794_s25, 4  ;;  %s699_s29 = int_to_ptr.vmem [resolvable:$false] %s698_s29 }
  0x20   : > { %s700_s30 = scalar_lea.vmem %s699_s29, 256  ;;  %p701_p11 = scmp.lt.s32.totalorder %s889_s9, %s699_s29 }
  0x21   : > { %p696_p0 = pnand %p694_p12, %p680_p13  ;;  %p702_p2 = scmp.lt.s32.totalorder %s700_s30, %s693_s24 }
  0x23   : > { %p697_p10 = pneg %p696_p0  ;;  %p703_p3 = por %p702_p2, %p701_p11 }
  0x25   : > { %p704_p4 = pnand %p703_p3, %p697_p10 }
  0x27   : > { %707 = shalt.err (!%p704_p4)
}
  0x28   : > { %623 = dma.hbm_to_vmem [thread:$0]  (!%p885_p9), %s881_s7, 128, %s889_s9, %s203_s11  }
  0x29   : > { %p1019_p1 = scmp.lt.s32.totalorder %s792_s20, 3  ;;  %p1020_p5 = scmp.ge.s32.totalorder %s792_s20, 1 }
  0x2a   : > { %s601_s6 = sshll.u32 %s874_s28, 1  ;;  %s615_s8 = sshll.u32 %s788_s19, 5 }
  0x2b   : > { %p923_p6 = pnand %p1020_p5, %p1019_p1  ;;  %s932_s14 = scalar_lea.hbm %s1011_s1, %s615_s8 }
  0x2c   : > { %s228_s15 = scalar_lea.vmem [#allocation4], %s601_s6  ;;  %s225_s7 = scalar_lea.sflag [#allocation5], %s874_s28 }
  0x2d   : > { %s1021_s5 = scalar_select %p923_p6, 1, 0 }
  0x2e   : > { %s239_s21 = sshll.u32 %s228_s15, 4  ;;  %s708_s9 = scalar_lea.hbm %s932_s14, 32  ;;  %s240_s21 = int_to_ptr.vmem [resolvable:$true] %s239_s21 }
  0x2f   : > { %p709_p10 = scmp.ne.s32.totalorder %s932_s14, %s708_s9  ;;  %s713_s24 = scalar_lea.hbm %s1011_s1, 64 }
  0x30   : > { %p714_p12 = scmp.lt.u32.totalorder %s932_s14, %s1011_s1  ;;  %p715_p0 = scmp.lt.u32.totalorder %s713_s24, %s708_s9 }
  0x31   : > { %p711_p11 = pnand %p709_p10, %p680_p13  ;;  %p717_p3 = scmp.lt.u32.totalorder %s708_s9, %s932_s14 }
  0x32   : > { %p716_p2 = por %p715_p0, %p714_p12 }
  0x33   : > { %p712_p8 = pneg %p711_p11 }
  0x34   : > { %p718_p4 = por %p717_p3, %p716_p2 }
  0x36   : > { %p719_p1 = pnand %p718_p4, %p712_p8 }
  0x38   : > { %722 = shalt.err (!%p719_p1)
}
  0x39   : > { %s723_s28 = scalar_lea.vmem %s240_s21, 32  ;;  %s795_s30 = smov [#allocation4]  }
  0x3a   : > { %p724_p5 = scmp.ne.s32.totalorder %s240_s21, %s723_s28  ;;  %s728_s6 = sshll.u32 %s795_s30, 4  ;;  %s729_s6 = int_to_ptr.vmem [resolvable:$false] %s728_s6 }
  0x3b   : > { %s730_s8 = scalar_lea.vmem %s729_s6, 64  ;;  %p731_p7 = scmp.lt.s32.totalorder %s240_s21, %s729_s6 }
  0x3c   : > { %p726_p10 = pnand %p724_p5, %p680_p13  ;;  %p732_p6 = scmp.lt.s32.totalorder %s730_s8, %s723_s28 }
  0x3e   : > { %p727_p11 = pneg %p726_p10  ;;  %p733_p0 = por %p732_p6, %p731_p7 }
  0x40   : > { %p734_p12 = pnand %p733_p0, %p727_p11 }
  0x42   : > { %737 = shalt.err (!%p734_p12)
}
  0x43   : > { %626 = dma.hbm_to_vmem [thread:$0]  (!%p885_p9), %s932_s14, 32, %s240_s21, %s225_s7  }
  0x44   : > { %p1022_p8 = scmp.ne.s32.totalorder %s1021_s5, 0 }
  0x45   : > { %s250_s12 = sand.u32 (!%p1022_p8), 1, %s776_s16   ;;  %p1023_p13 = scmp.ne.s32.totalorder (!%p1022_p8), %s1017_s26, 0 }
  0x46   : > { %248 = sbr.rel (%p1022_p8) target bundleno = 243 (0xf3), region = 28  ;;  %s605_s13 = sshll.u32 (!%p1022_p8), %s250_s12, 3 }
  0x47   : > { %s251_s15 = scalar_lea.sflag (!%p1022_p8), [#allocation3], %s250_s12  ;;  %s254_s9 = scalar_lea.vmem (!%p1022_p8), [#allocation2], %s605_s13 }
  0x4d   : > { %763 = dma.done.wait (%p1023_p13), %s251_s15, 128  }
  0x4e   : > { %765 = vsyncadd (%p1023_p13), %s251_s15, 4294967168  ;;  %s606_s11 = sshll.u32 %s250_s12, 1  ;;  %s260_s23 = scalar_lea.sflag [#allocation5], %s250_s12 }
  0x4f   : > { %s263_s10 = scalar_lea.vmem [#allocation4], %s606_s11 }
  0x50   : > { %767 = dma.done.wait (%p1023_p13), %s260_s23, 32  }
  0x51   : > { %769 = vsyncadd (%p1023_p13), %s260_s23, 4294967264  ;;  %v344_v0 = vlaneseq  ;;  %p313_p7 = scmp.lt.s32.totalorder %s784_s18, 1  ;;  %vm338_vm0 = vcmask 3072   ;;  %v796_v4 = vmov 0.0   ;;  %v342_v5 = vld [vmem:[%s254_s9] sm:$0xff]  ;;  %vm367_vm1 = vcmask 1043456  }
  0x52   : > { %v343_v6 = vld [vmem:[%s263_s10] sm:$0x3]  ;;  %v357_v9 = vcombine.high %v342_v5, %v342_v5  ;;  %v365_v10 = vmul.f32 %v342_v5, %v342_v5 }
  0x53   : > { %v345_v1 = vshrl.u32 %v344_v0, 7  ;;  %s1032_s18 = smov (!%p313_p7, %s784_s18), 1 }
  0x54   : > { %s967_s5 = sshll.u32 %s1032_s18, 2  ;;  %v386_v11 = vcombine.high %v365_v10, %v365_v10  ;;  %v388_v12 = vsel %vm367_vm1, %v365_v10, 0.0 }
  0x55   : > { %v348_v2 = vsub.s32 0, %v345_v1  ;;  %v352_v3 = vsub.s32 1, %v345_v1  ;;  %s973_s7 = scalar_lea.vmem %s1012_s2, %s967_s5  ;;  %s333_s24 = scalar_lea.vmem %s1014_s4, %s967_s5 }
  0x56   : > { %339 = vst.msk [vmem:[%s973_s7] sm:$0xf] %vm338_vm0, %v796_v4  ;;  %v389_v19 = vsel %vm367_vm1, %v386_v11, 0.0  ;;  %s326_s28 = scalar_lea.vmem %s1013_s3, %s967_s5  ;;  %341 = vst.msk [vmem:[%s333_s24] sm:$0xf] %vm338_vm0, %v796_v4 }
  0x57   : > { %v349_v7 = vrot.slane %v343_v6, %v348_v2  ;;  %v353_v8 = vrot.slane %v343_v6, %v352_v3  ;;  %v390_v22 = vadd.f32 %v389_v19, %v388_v12  ;;  %340 = vst.msk [vmem:[%s326_s28] sm:$0xf] %vm338_vm0, %v796_v4 }
  0x59   : > { %vm354_vm2 = vcmp.eq.s32.totalorder %v349_v7, %v345_v1  ;;  %vm355_vm3 = vcmp.eq.s32.totalorder %v353_v8, %v345_v1  ;;  %391 = vadd.xlane.f32.xlu1 %v390_v22 }
  0x5a   : > { %v359_v13 = vsel %vm354_vm2, %v342_v5, 0.0  ;;  %v360_v14 = vsel %vm355_vm3, %v357_v9, 0.0  ;;  %v610_v15 = vsel %vm354_vm2, 1.0, %v796_v4  ;;  %v611_v16 = vsel %vm355_vm3, 1.0, %v796_v4 }
  0x5b   : > { %v368_v17 = vsel %vm367_vm1, %v359_v13, 0.0  ;;  %v369_v18 = vsel %vm367_vm1, %v360_v14, 0.0  ;;  %v377_v20 = vsel %vm367_vm1, %v610_v15, 0.0  ;;  %v378_v23 = vsel %vm367_vm1, %v611_v16, 0.0 }
  0x5c   : > { %v370_v21 = vadd.f32 %v369_v18, %v368_v17  ;;  %v379_v24 = vadd.f32 %v378_v23, %v377_v20 }
  0x5d   : > { %v366_v25 = vld [vmem:[%s973_s7] sm:$0xf] }
  0x5e   : > { %371 = vadd.xlane.f32.xlu0 %v370_v21  ;;  %v384_v26 = vld [vmem:[%s333_s24] sm:$0xf] }
  0x5f   : > { %v376_v31 = vld [vmem:[%s326_s28] sm:$0xf] }
  0x62   : > { %380 = vadd.xlane.f32.xlu0 %v379_v24 }
  0xe6   : > { %v392_v28 = vpop.xlane.xlu1 %391 }
  0xe7   : > { %v393_v30 = vadd.f32 %v392_v28, %v384_v26 }
  0xe9   : > { %394 = vst.msk [vmem:[%s333_s24] sm:$0xf] %vm338_vm0, %v393_v30 }
  0xeb   : > { %v372_v27 = vpop.xlane.xlu0 %371 }
  0xec   : > { %v373_v29 = vadd.f32 %v372_v27, %v366_v25 }
  0xee   : > { %375 = vst.msk [vmem:[%s973_s7] sm:$0xf] %vm338_vm0, %v373_v29 }
  0xef   : > { %v381_v32 = vpop.xlane.xlu0 %380 }
  0xf0   : > { %v382_v33 = vadd.f32 %v381_v32, %v376_v31 }
  0xf2   : > { %383 = vst.msk [vmem:[%s326_s28] sm:$0xf] %vm338_vm0, %v382_v33 }
  0xf3 PF: > { %s21_s20 = sadd.s32 1, %s792_s20   ;;  %s1024_s15 = smov %s776_s16 }
  0xf4   : > { %p18_p9 = scmp.ge.s32.totalorder %s21_s20, 4   ;;  %s1025_s16 = smov %s780_s17 }
  0xf5   : > { %s1026_s17 = smov %s871_s27  ;;  %s1027_s18 = smov %s788_s19 }
  0xf6   : > { %s1028_s19 = smov %s1030_s22  ;;  %20 = sbr.rel (!%p18_p9) target bundleno = 6 (0x6), region = 109 }
  0xfd   :  { %460 = vsyncpa [#allocation3], 1 }
  0xfe   :  { %462 = vsyncpa [#allocation3 + $0x1], 1 }
  0xff   :  { %463 = vsyncpa [#allocation5], 1 }
 0x100   :  { %465 = vsyncpa [#allocation5 + $0x1], 1 }

</bundles_post_ra>
